<compile_context>
chip_gen: v7x
topology: tpu7x:2x2x1
jax: 0.10.0
libtpu: 0.0.40
codegen_flags: <defaults>
</compile_context>

<pallas_src>
import functools

import jax
import jax.numpy as jnp
from jax.experimental import pallas as pl
from jax.experimental.pallas import tpu as pltpu


def _round_up(n, m):
    return ((n + m - 1) // m) * m


def _sigmoid(x):
    # sigmoid(x) == 0.5 * (tanh(0.5 * x) + 1): one EUP op (tanh) instead of
    # exp + reciprocal; exact up to fp rounding.
    return 0.5 * (jnp.tanh(0.5 * x) + 1.0)


def _const_layout(conv_out, hidden):
    """Sublane-aligned packing of all small bias/VPU-weight vectors into one
    (total, 1) f32 column.  Returns ({name: (offset, size)}, total_rows)."""
    segs = (('conv_b', conv_out), ('lstm_b', 6 * hidden),
            ('attn_b', 2 * hidden), ('cls_w', 2 * hidden), ('cls_b', 1))
    layout, off = {}, 0
    for name, n in segs:
        layout[name] = (off, n)
        off += _round_up(n, 8)
    return layout, _round_up(off, 8)


def _eca_kernel(x_ref, bw_ref, lw_ref, aw_ref, c_ref, out_ref, *,
                hidden, window, layout, compute_dtype, act_dtype):
    H = hidden
    W = window
    F = lw_ref.shape[1]              # conv features == LSTM input size
    WF = bw_ref.shape[0]             # W * F

    def cseg(name):                  # static sublane slice of the const column
        off, n = layout[name]
        return c_ref[off:off + n, :]                         # (n, 1) f32

    # ---- Conv1d(kernel_size=1) over every window position as ONE MXU matmul
    # in "features-on-sublanes / batch-on-lanes" orientation.
    g = jnp.dot(bw_ref[...], x_ref[...],
                preferred_element_type=jnp.float32)          # (W*F, TB) f32

    # ---- MaxPool1d over the full window, hoisted ahead of the sigmoid.
    # Exact: sigmoid is monotonic and the conv bias is constant over W.
    # Halving tree over sublane-aligned row blocks (no reshape / relayout).
    if W & (W - 1) == 0:
        rows = WF
        while rows > F:
            rows //= 2
            g = jnp.maximum(g[:rows, :], g[rows:2 * rows, :])
        m = g                                                # (F, TB)
    else:
        m = g[0:F, :]
        for w in range(1, W):
            m = jnp.maximum(m, g[w * F:(w + 1) * F, :])

    p = _sigmoid((m + cseg('conv_b')).astype(act_dtype))     # (F, TB)
    # Dropout(p=0.01): identity at inference time.

    # ---- Bidirectional LSTM, sequence length 1, zero initial state.
    # Both directions fused into ONE matmul; forget gate dropped (c0 == 0).
    # Fused row layout: [i_f; i_b | g_f; g_b | o_f; o_b]  -> (6H, TB).
    gates = (jnp.dot(lw_ref[...], p.astype(compute_dtype),
                     preferred_element_type=jnp.float32)
             + cseg('lstm_b')).astype(act_dtype)
    i = _sigmoid(gates[0:2 * H, :])
    gg = jnp.tanh(gates[2 * H:4 * H, :])
    o = _sigmoid(gates[4 * H:6 * H, :])
    # Rows 0:H == h_fwd, H:2H == h_bwd -> already PyTorch's [h_fwd | h_bwd]
    # ordering; act2 = Tanh applied on top.
    h = jnp.tanh(o * jnp.tanh(i * gg))                       # (2H, TB)

    # ---- Attention gate + classifier head.
    attn = _sigmoid(
        (jnp.dot(aw_ref[...], h.astype(compute_dtype),
                 preferred_element_type=jnp.float32)
         + cseg('attn_b')).astype(act_dtype))
    z = h * attn                                             # (2H, TB)

    # Linear(2H -> 1): VPU multiply + sublane reduction.  Batch stays on the
    # lane axis, so this store is a dense, unmasked lane-major write.
    logit = (jnp.sum(z.astype(jnp.float32) * cseg('cls_w'),
                     axis=0, keepdims=True)
             + cseg('cls_b'))                                # (1, TB) f32
    out_ref[...] = jnp.tanh(logit).astype(out_ref.dtype)


def make_params(key, dim=4, conv_out=16, hidden=32):
    """Deterministic synthetic parameters in PyTorch layout."""
    ks = jax.random.split(key, 12)
    s = 0.1
    n = lambda k, shape: s * jax.random.normal(k, shape, jnp.float32)
    return {
        'conv_w': n(ks[0], (conv_out, dim, 1)),      # Conv1d weight
        'conv_b': n(ks[1], (conv_out,)),
        # LSTM input->hidden weights & biases, PyTorch gate order (i, f, g, o).
        # weight_hh_* are mathematically dead here (h0 == 0) so not generated.
        'w_ih_f': n(ks[2], (4 * hidden, conv_out)),
        'b_ih_f': n(ks[3], (4 * hidden,)),
        'b_hh_f': n(ks[4], (4 * hidden,)),
        'w_ih_b': n(ks[5], (4 * hidden, conv_out)),
        'b_ih_b': n(ks[6], (4 * hidden,)),
        'b_hh_b': n(ks[7], (4 * hidden,)),
        'attn_w': n(ks[8], (2 * hidden, 2 * hidden)),
        'attn_b': n(ks[9], (2 * hidden,)),
        'cls_w': n(ks[10], (1, 2 * hidden)),
        'cls_b': n(ks[11], (1,)),
    }


def prepare_params(tp, hidden, window, compute_dtype):
    """Algebraic fusion of the PyTorch weights into kernel-ready arrays
    (transposed, batch-on-lanes orientation)."""
    H, W = hidden, window
    cw = tp['conv_w'][:, :, 0]                               # (F, C) torch (out, in)
    F, _C = cw.shape

    # Conv over every window position as one block-diagonal matmul:
    #   bw[w*F + f, w*C + c] = cw[f, c]
    bw = jnp.kron(jnp.eye(W, dtype=cw.dtype), cw)            # (W*F, W*C)

    def igo(w_ih):                       # torch gate order (i, f, g, o)
        return w_ih[0:H], w_ih[2 * H:3 * H], w_ih[3 * H:4 * H]

    i_f, g_f, o_f = igo(tp['w_ih_f'])
    i_b, g_b, o_b = igo(tp['w_ih_b'])
    lstm_w = jnp.concatenate([i_f, i_b, g_f, g_b, o_f, o_b], axis=0)   # (6H, F)

    bf = tp['b_ih_f'] + tp['b_hh_f']
    bb = tp['b_ih_b'] + tp['b_hh_b']
    lstm_b = jnp.concatenate(
        [bf[0:H], bb[0:H], bf[2 * H:3 * H], bb[2 * H:3 * H],
         bf[3 * H:4 * H], bb[3 * H:4 * H]])                             # (6H,)

    # All small bias / VPU-weight vectors packed into ONE f32 column ref.
    layout, total = _const_layout(F, H)
    consts = jnp.zeros((total, 1), jnp.float32)
    for name, arr in (('conv_b', tp['conv_b']), ('lstm_b', lstm_b),
                      ('attn_b', tp['attn_b']), ('cls_w', tp['cls_w'][0]),
                      ('cls_b', tp['cls_b'])):
        off, n = layout[name]
        consts = consts.at[off:off + n, 0].set(arr.astype(jnp.float32))

    kp = {
        'conv_w': bw.astype(compute_dtype),                  # (W*F, W*C)
        'lstm_w': lstm_w.astype(compute_dtype),              # (6H, F)
        'attn_w': tp['attn_w'].astype(compute_dtype),        # (2H, 2H), torch layout
        'consts': consts,                                    # (total, 1) f32
    }
    return kp, layout


def cnn_lstm_eca_forward(x, torch_params, hidden, *, block_b=4096,
                         compute_dtype=jnp.bfloat16, act_dtype=None):
    B, W, C = x.shape
    if act_dtype is None:
        act_dtype = compute_dtype
    kp, layout = prepare_params(torch_params, hidden, W, compute_dtype)

    # Batch tile (lane dimension).  Small batches: one block covering the
    # whole (padded) batch.  Large batches: multiple-of-128 lane tiles so
    # every block stays lane-dense.  (On v7x prefer block_b such that the
    # grid B_pad//TB is even so both TensorCores stay busy.)
    if B <= block_b:
        TB = _round_up(B, 8)
    else:
        TB = _round_up(block_b, 128)
    B_pad = _round_up(B, TB)

    # Repack host-side to the transposed "features-on-sublanes /
    # batch-on-lanes" layout; lane-dense input, no in-kernel relayouts.
    x2 = x.reshape(B, W * C)
    if B_pad != B:
        x2 = jnp.pad(x2, ((0, B_pad - B), (0, 0)))
    x_t = x2.astype(compute_dtype).T                          # (W*C, B_pad)

    def const_spec(arr):
        return pl.BlockSpec(arr.shape, lambda i: (0, 0))

    kernel = functools.partial(_eca_kernel, hidden=hidden, window=W,
                               layout=layout, compute_dtype=compute_dtype,
                               act_dtype=act_dtype)

    out = pl.pallas_call(
        kernel,
        out_shape=jax.ShapeDtypeStruct((1, B_pad), jnp.float32),
        grid=(B_pad // TB,),
        in_specs=[
            pl.BlockSpec((W * C, TB), lambda i: (0, i)),
            const_spec(kp['conv_w']),
            const_spec(kp['lstm_w']),
            const_spec(kp['attn_w']),
            const_spec(kp['consts']),
        ],
        out_specs=pl.BlockSpec((1, TB), lambda i: (0, i)),
        compiler_params=pltpu.CompilerParams(
            dimension_semantics=("parallel",),
            vmem_limit_bytes=48 * 1024 * 1024),
    )(x_t, kp['conv_w'], kp['lstm_w'], kp['attn_w'], kp['consts'])
    # Padded batch columns carry finite garbage; slice them off.
    return out[0, :B].reshape(B, 1)


def reference_forward(x, tp, hidden):
    """Pure-JAX f32 reference following the PyTorch module exactly."""
    H = hidden
    w = tp['conv_w'][:, :, 0]                                 # (16, 4)
    y = jax.nn.sigmoid(jnp.einsum('bwc,fc->bwf', x, w) + tp['conv_b'])
    p = jnp.max(y, axis=1)                                    # maxpool over W

    def cell(w_ih, b_ih, b_hh):
        g = p @ w_ih.T + b_ih + b_hh
        i = jax.nn.sigmoid(g[:, 0:H])
        # forget gate multiplies c0 == 0, so it drops out of the result
        gg = jnp.tanh(g[:, 2 * H:3 * H])
        o = jax.nn.sigmoid(g[:, 3 * H:4 * H])
        return o * jnp.tanh(i * gg)

    h = jnp.tanh(jnp.concatenate(
        [cell(tp['w_ih_f'], tp['b_ih_f'], tp['b_hh_f']),
         cell(tp['w_ih_b'], tp['b_ih_b'], tp['b_hh_b'])], axis=-1))
    attn = jax.nn.sigmoid(h @ tp['attn_w'].T + tp['attn_b'])
    z = h * attn
    return jnp.tanh(z @ tp['cls_w'].T + tp['cls_b'])


if __name__ == "__main__":
    # Small shapes consistent with the module: window=16, dim=4, lstm_units=32.
    B, W, DIM, HID = 2, 16, 4, 32
    key = jax.random.PRNGKey(0)
    kx, kparam = jax.random.split(key)
    x = jax.random.normal(kx, (B, W, DIM), jnp.float32)
    tp = make_params(kparam, dim=DIM, conv_out=16, hidden=HID)

    ref = reference_forward(x, tp, HID)

    # Exact-semantics check (full f32 compute path, f32 activations).
    out_f32 = jax.block_until_ready(
        cnn_lstm_eca_forward(x, tp, HID, compute_dtype=jnp.float32))
    assert out_f32.shape == (B, 1), out_f32.shape
    assert jnp.allclose(out_f32, ref, atol=1e-4, rtol=1e-4), (out_f32, ref)

    # Default fast path: bf16 matmul inputs + bf16 activations, f32 accumulation.
    out = jax.block_until_ready(cnn_lstm_eca_forward(x, tp, HID))
    assert out.shape == (B, 1), out.shape
    assert jnp.allclose(out, ref, atol=2e-2, rtol=0.0), (out, ref)

    print("KERNEL_OK")
</pallas_src>

<mosaic_0001>
module attributes {stable_mosaic.version = 11 : i64} {
  func.func @_eca_kernel(%arg0: i32, %arg1: memref<64x8xf32, #tpu.memory_space<vmem>>, %arg2: memref<256x64xf32, #tpu.memory_space<vmem>>, %arg3: memref<192x16xf32, #tpu.memory_space<vmem>>, %arg4: memref<64x64xf32, #tpu.memory_space<vmem>>, %arg5: memref<344x1xf32, #tpu.memory_space<vmem>>, %arg6: memref<1x8xf32, #tpu.memory_space<vmem>>) attributes {dimension_semantics = [#tpu.dimension_semantics<parallel>], iteration_bounds = array<i64: 1>, scalar_prefetch = 0 : i64, scratch_operands = 0 : i64, tpu.core_type = #tpu.core_type<tc>, window_params = [{transform_indices = @transform_0, window_bounds = array<i64: 64, 8>}, {pipeline_mode = #tpu.pipeline_mode<synchronous>, transform_indices = @transform_1, window_bounds = array<i64: 256, 64>}, {pipeline_mode = #tpu.pipeline_mode<synchronous>, transform_indices = @transform_2, window_bounds = array<i64: 192, 16>}, {pipeline_mode = #tpu.pipeline_mode<synchronous>, transform_indices = @transform_3, window_bounds = array<i64: 64, 64>}, {pipeline_mode = #tpu.pipeline_mode<synchronous>, transform_indices = @transform_4, window_bounds = array<i64: 344, 1>}, {transform_indices = @transform_5, window_bounds = array<i64: 1, 8>}]} {
    %c0 = arith.constant 0 : index
    %c0_0 = arith.constant 0 : index
    %0 = vector.load %arg2[%c0, %c0_0] : memref<256x64xf32, #tpu.memory_space<vmem>>, vector<256x64xf32>
    %c0_1 = arith.constant 0 : index
    %c0_2 = arith.constant 0 : index
    %1 = vector.load %arg1[%c0_1, %c0_2] : memref<64x8xf32, #tpu.memory_space<vmem>>, vector<64x8xf32>
    %cst = arith.constant dense<0.000000e+00> : vector<256x8xf32>
    %2 = tpu.matmul %0, %1, %cst {dimension_numbers = #tpu.dot_dimension_numbers<[1], [0], [0], [1], [0, 0, 1, 1], [], []>} : vector<256x64xf32>, vector<64x8xf32>, vector<256x8xf32> -> vector<256x8xf32>
    %3 = vector.extract_strided_slice %2 {offsets = [0, 0], sizes = [128, 8], strides = [1, 1]} : vector<256x8xf32> to vector<128x8xf32>
    %4 = vector.extract_strided_slice %2 {offsets = [128, 0], sizes = [128, 8], strides = [1, 1]} : vector<256x8xf32> to vector<128x8xf32>
    %5 = arith.maximumf %3, %4 : vector<128x8xf32>
    %6 = vector.extract_strided_slice %5 {offsets = [0, 0], sizes = [64, 8], strides = [1, 1]} : vector<128x8xf32> to vector<64x8xf32>
    %7 = vector.extract_strided_slice %5 {offsets = [64, 0], sizes = [64, 8], strides = [1, 1]} : vector<128x8xf32> to vector<64x8xf32>
    %8 = arith.maximumf %6, %7 : vector<64x8xf32>
    %9 = vector.extract_strided_slice %8 {offsets = [0, 0], sizes = [32, 8], strides = [1, 1]} : vector<64x8xf32> to vector<32x8xf32>
    %10 = vector.extract_strided_slice %8 {offsets = [32, 0], sizes = [32, 8], strides = [1, 1]} : vector<64x8xf32> to vector<32x8xf32>
    %11 = arith.maximumf %9, %10 : vector<32x8xf32>
    %12 = vector.extract_strided_slice %11 {offsets = [0, 0], sizes = [16, 8], strides = [1, 1]} : vector<32x8xf32> to vector<16x8xf32>
    %13 = vector.extract_strided_slice %11 {offsets = [16, 0], sizes = [16, 8], strides = [1, 1]} : vector<32x8xf32> to vector<16x8xf32>
    %14 = arith.maximumf %12, %13 : vector<16x8xf32>
    %c0_3 = arith.constant 0 : index
    %c0_4 = arith.constant 0 : index
    %15 = vector.load %arg5[%c0_3, %c0_4] : memref<344x1xf32, #tpu.memory_space<vmem>>, vector<16x1xf32>
    %16 = vector.broadcast %15 : vector<16x1xf32> to vector<16x8xf32>
    %17 = arith.addf %14, %16 : vector<16x8xf32>
    %cst_5 = arith.constant 5.000000e-01 : f32
    %18 = vector.broadcast %cst_5 : f32 to vector<16x8xf32>
    %19 = arith.mulf %18, %17 : vector<16x8xf32>
    %20 = math.tanh %19 : vector<16x8xf32>
    %cst_6 = arith.constant 1.000000e+00 : f32
    %21 = vector.broadcast %cst_6 : f32 to vector<16x8xf32>
    %22 = arith.addf %20, %21 : vector<16x8xf32>
    %cst_7 = arith.constant 5.000000e-01 : f32
    %23 = vector.broadcast %cst_7 : f32 to vector<16x8xf32>
    %24 = arith.mulf %23, %22 : vector<16x8xf32>
    %c0_8 = arith.constant 0 : index
    %c0_9 = arith.constant 0 : index
    %25 = vector.load %arg3[%c0_8, %c0_9] : memref<192x16xf32, #tpu.memory_space<vmem>>, vector<192x16xf32>
    %cst_10 = arith.constant dense<0.000000e+00> : vector<192x8xf32>
    %26 = tpu.matmul %25, %24, %cst_10 {dimension_numbers = #tpu.dot_dimension_numbers<[1], [0], [0], [1], [0, 0, 1, 1], [], []>} : vector<192x16xf32>, vector<16x8xf32>, vector<192x8xf32> -> vector<192x8xf32>
    %c16 = arith.constant 16 : index
    %c0_11 = arith.constant 0 : index
    %27 = vector.load %arg5[%c16, %c0_11] : memref<344x1xf32, #tpu.memory_space<vmem>>, vector<192x1xf32>
    %28 = vector.broadcast %27 : vector<192x1xf32> to vector<192x8xf32>
    %29 = arith.addf %26, %28 : vector<192x8xf32>
    %30 = vector.extract_strided_slice %29 {offsets = [0, 0], sizes = [64, 8], strides = [1, 1]} : vector<192x8xf32> to vector<64x8xf32>
    %cst_12 = arith.constant 5.000000e-01 : f32
    %31 = vector.broadcast %cst_12 : f32 to vector<64x8xf32>
    %32 = arith.mulf %31, %30 : vector<64x8xf32>
    %33 = math.tanh %32 : vector<64x8xf32>
    %cst_13 = arith.constant 1.000000e+00 : f32
    %34 = vector.broadcast %cst_13 : f32 to vector<64x8xf32>
    %35 = arith.addf %33, %34 : vector<64x8xf32>
    %cst_14 = arith.constant 5.000000e-01 : f32
    %36 = vector.broadcast %cst_14 : f32 to vector<64x8xf32>
    %37 = arith.mulf %36, %35 : vector<64x8xf32>
    %38 = vector.extract_strided_slice %29 {offsets = [64, 0], sizes = [64, 8], strides = [1, 1]} : vector<192x8xf32> to vector<64x8xf32>
    %39 = math.tanh %38 : vector<64x8xf32>
    %40 = vector.extract_strided_slice %29 {offsets = [128, 0], sizes = [64, 8], strides = [1, 1]} : vector<192x8xf32> to vector<64x8xf32>
    %cst_15 = arith.constant 5.000000e-01 : f32
    %41 = vector.broadcast %cst_15 : f32 to vector<64x8xf32>
    %42 = arith.mulf %41, %40 : vector<64x8xf32>
    %43 = math.tanh %42 : vector<64x8xf32>
    %cst_16 = arith.constant 1.000000e+00 : f32
    %44 = vector.broadcast %cst_16 : f32 to vector<64x8xf32>
    %45 = arith.addf %43, %44 : vector<64x8xf32>
    %cst_17 = arith.constant 5.000000e-01 : f32
    %46 = vector.broadcast %cst_17 : f32 to vector<64x8xf32>
    %47 = arith.mulf %46, %45 : vector<64x8xf32>
    %48 = arith.mulf %37, %39 : vector<64x8xf32>
    %49 = math.tanh %48 : vector<64x8xf32>
    %50 = arith.mulf %47, %49 : vector<64x8xf32>
    %51 = math.tanh %50 : vector<64x8xf32>
    %c0_18 = arith.constant 0 : index
    %c0_19 = arith.constant 0 : index
    %52 = vector.load %arg4[%c0_18, %c0_19] : memref<64x64xf32, #tpu.memory_space<vmem>>, vector<64x64xf32>
    %cst_20 = arith.constant dense<0.000000e+00> : vector<64x8xf32>
    %53 = tpu.matmul %52, %51, %cst_20 {dimension_numbers = #tpu.dot_dimension_numbers<[1], [0], [0], [1], [0, 0, 1, 1], [], []>} : vector<64x64xf32>, vector<64x8xf32>, vector<64x8xf32> -> vector<64x8xf32>
    %c208 = arith.constant 208 : index
    %c0_21 = arith.constant 0 : index
    %54 = vector.load %arg5[%c208, %c0_21] : memref<344x1xf32, #tpu.memory_space<vmem>>, vector<64x1xf32>
    %55 = vector.broadcast %54 : vector<64x1xf32> to vector<64x8xf32>
    %56 = arith.addf %53, %55 : vector<64x8xf32>
    %cst_22 = arith.constant 5.000000e-01 : f32
    %57 = vector.broadcast %cst_22 : f32 to vector<64x8xf32>
    %58 = arith.mulf %57, %56 : vector<64x8xf32>
    %59 = math.tanh %58 : vector<64x8xf32>
    %cst_23 = arith.constant 1.000000e+00 : f32
    %60 = vector.broadcast %cst_23 : f32 to vector<64x8xf32>
    %61 = arith.addf %59, %60 : vector<64x8xf32>
    %cst_24 = arith.constant 5.000000e-01 : f32
    %62 = vector.broadcast %cst_24 : f32 to vector<64x8xf32>
    %63 = arith.mulf %62, %61 : vector<64x8xf32>
    %64 = arith.mulf %51, %63 : vector<64x8xf32>
    %c272 = arith.constant 272 : index
    %c0_25 = arith.constant 0 : index
    %65 = vector.load %arg5[%c272, %c0_25] : memref<344x1xf32, #tpu.memory_space<vmem>>, vector<64x1xf32>
    %66 = vector.broadcast %65 : vector<64x1xf32> to vector<64x8xf32>
    %67 = arith.mulf %64, %66 : vector<64x8xf32>
    %cst_26 = arith.constant dense<0.000000e+00> : vector<8xf32>
    %68 = vector.multi_reduction <add>, %67, %cst_26 [0] : vector<64x8xf32> to vector<8xf32>
    %69 = vector.shape_cast %68 : vector<8xf32> to vector<1x8xf32>
    %c336 = arith.constant 336 : index
    %c0_27 = arith.constant 0 : index
    %70 = vector.load %arg5[%c336, %c0_27] : memref<344x1xf32, #tpu.memory_space<vmem>>, vector<1x1xf32>
    %71 = vector.broadcast %70 : vector<1x1xf32> to vector<1x8xf32>
    %72 = arith.addf %69, %71 : vector<1x8xf32>
    %73 = math.tanh %72 : vector<1x8xf32>
    %c0_28 = arith.constant 0 : index
    %c0_29 = arith.constant 0 : index
    %74 = vector.load %arg6[%c0_28, %c0_29] : memref<1x8xf32, #tpu.memory_space<vmem>>, vector<1x8xf32>
    tpu.vector_store %arg6[%c0_28, %c0_29], %73 {strides = array<i32>} : memref<1x8xf32, #tpu.memory_space<vmem>>, vector<1x8xf32>,
    return
  }
  func.func @transform_0(%arg0: i32) -> (i32, i32) {
    %c0_i32 = arith.constant 0 : i32
    %c0_i32_0 = arith.constant 0 : i32
    return %c0_i32, %arg0 : i32, i32
  }
  func.func @transform_1(%arg0: i32) -> (i32, i32) {
    %c0_i32 = arith.constant 0 : i32
    %c0_i32_0 = arith.constant 0 : i32
    %c0_i32_1 = arith.constant 0 : i32
    return %c0_i32, %c0_i32_0 : i32, i32
  }
  func.func @transform_2(%arg0: i32) -> (i32, i32) {
    %c0_i32 = arith.constant 0 : i32
    %c0_i32_0 = arith.constant 0 : i32
    %c0_i32_1 = arith.constant 0 : i32
    return %c0_i32, %c0_i32_0 : i32, i32
  }
  func.func @transform_3(%arg0: i32) -> (i32, i32) {
    %c0_i32 = arith.constant 0 : i32
    %c0_i32_0 = arith.constant 0 : i32
    %c0_i32_1 = arith.constant 0 : i32
    return %c0_i32, %c0_i32_0 : i32, i32
  }
  func.func @transform_4(%arg0: i32) -> (i32, i32) {
    %c0_i32 = arith.constant 0 : i32
    %c0_i32_0 = arith.constant 0 : i32
    %c0_i32_1 = arith.constant 0 : i32
    return %c0_i32, %c0_i32_0 : i32, i32
  }
  func.func @transform_5(%arg0: i32) -> (i32, i32) {
    %c0_i32 = arith.constant 0 : i32
    %c0_i32_0 = arith.constant 0 : i32
    return %c0_i32, %arg0 : i32, i32
  }
}

</mosaic_0001>

<bundles_post_ra>
// kernel: tpu_custom_call.1
= control target key start
LH: loop header
LB: loop body
LE: loop exit
PB: predicated region body
PF: predicated region fallthrough
CT: control target
= control target key end

     0   :  { %vm61_vm0 = vcmask 523264   ;;  %v1736_v5 = vmov 0   ;;  %s2253_s0 = inlined_call_operand.vmem [shape: f32[64,8], index: 0, kind: input, shape index: {}]   ;;  %s2254_s1 = inlined_call_operand.vmem [shape: f32[256,64], index: 1, kind: input, shape index: {}]   ;;  %s2255_s2 = inlined_call_operand.vmem [shape: f32[192,16], index: 2, kind: input, shape index: {}]   ;;  %s2256_s3 = inlined_call_operand.vmem [shape: f32[64,64], index: 3, kind: input, shape index: {}]   ;;  %s2257_s4 = inlined_call_operand.vmem [shape: f32[344,1], index: 4, kind: input, shape index: {}]   ;;  %s2258_s5 = inlined_call_operand.hbm [shape: f32[1,8], index: 5, kind: output, shape index: {}]  }
   0x1   :  { %v53_v0 = vld [vmem:[%s2253_s0] sm:$0xff]  ;;  %v54_v1 = vld [vmem:[%s2253_s0 + $0x8] sm:$0xff]  ;;  %v55_v2 = vld [vmem:[%s2253_s0 + $0x10] sm:$0xff]  ;;  %1608 = vset.pattern.permute.xlu0 %v1736_v5  ;;  %1609 = vset.pattern.permute.xlu1 %v1736_v5 }
   0x2   :  { %v1570_v3 = vpack.c.bf16 %v54_v1, %v53_v0  ;;  %v56_v4 = vld [vmem:[%s2253_s0 + $0x18] sm:$0xff]  ;;  %v57_v7 = vld [vmem:[%s2253_s0 + $0x20] sm:$0xff]  ;;  %v58_v8 = vld [vmem:[%s2253_s0 + $0x28] sm:$0xff] }
   0x3   :  { %v1574_v6 = vpack.c.bf16 %v56_v4, %v55_v2  ;;  %v21_v9 = vld [vmem:[%s2254_s1] sm:$0xff]  ;;  %v1578_v10 = vpack.c.bf16 %v58_v8, %v57_v7  ;;  %v59_v11 = vld [vmem:[%s2253_s0 + $0x30] sm:$0xff]  ;;  %v60_v12 = vld [vmem:[%s2253_s0 + $0x38] sm:$0xff] }
   0x4   :  { %1571 = vmatprep.subr.bf16.mxu0 %v1570_v3  ;;  %1454 = vmatprep.mubr.msk.f32.mxu0 %vm61_vm0, %v21_v9  ;;  %v1582_v13 = vpack.c.bf16 %v60_v12, %v59_v11  ;;  %v413_v14 = vld [vmem:[%s2257_s4] sm:$0xff]  ;;  %v414_v15 = vld [vmem:[%s2257_s4 + $0x8] sm:$0xff]  ;;  %v23_v17 = vld [vmem:[%s2254_s1 + $0x10] sm:$0xff] }
   0x5   :  { %1573 = vmatpush3.bf16.msra.mxu0 %v1570_v3  ;;  %417 = vperm.xlu0 %1608, %v413_v14   ;;  %v22_v16 = vld [vmem:[%s2254_s1 + $0x8] sm:$0xff]  ;;  %v461_v18 = vld [vmem:[%s2257_s4 + $0x20] sm:$0xff]  ;;  %v24_v19 = vld [vmem:[%s2254_s1 + $0x18] sm:$0xff] }
   0x6   :  { %1575 = vmatprep.subr.bf16.mxu0 %v1574_v6 }
   0x9   :  { %1577 = vmatpush3.bf16.msra.mxu0 %v1574_v6  ;;  %422 = vperm.xlu0 %1608, %v414_v15  }
   0xa   :  { %1579 = vmatprep.subr.bf16.mxu0 %v1578_v10 }
   0xd   :  { %1581 = vmatpush3.bf16.msra.mxu0 %v1578_v10 }
   0xe   :  { %1583 = vmatprep.subr.bf16.mxu0 %v1582_v13 }
  0x11   :  { %1585 = vmatpush3.bf16.msra.mxu0 %v1582_v13 }
  0x14   :  { %1455 = vmatmul.mubr.msk.f32.vlgmr.msra.gmra.mrb[0].mxu0 %vm61_vm0, %v22_v16 }
  0x15   :  { %1457 = vmatprep.mubr.msk.f32.mxu0 %vm61_vm0, %v23_v17 }
  0x16   :  { %10 = vsyncpa [#allocation3], 0  ;;  %v25_v20 = vld [vmem:[%s2254_s1 + $0x20] sm:$0xff]  ;;  %495 = vperm.xlu0 %1608, %v461_v18   ;;  %v467_v21 = vld [vmem:[%s2257_s4 + $0x50] sm:$0xff]  ;;  %vm603_vm1 = vcmask 130048   ;;  %vm1246_vm2 = vcmask 64512  }
  0x17   :  { %v26_v22 = vld [vmem:[%s2254_s1 + $0x28] sm:$0xff]  ;;  %v27_v23 = vld [vmem:[%s2254_s1 + $0x30] sm:$0xff]  ;;  %v28_v25 = vld [vmem:[%s2254_s1 + $0x38] sm:$0xff]  ;;  %vm1276_vm3 = vcmask 57344  }
  0x18   :  { %1458 = vmatmul.mubr.msk.f32.gmra.mrb[2].mxu0 %vm61_vm0, %v24_v19  ;;  %v463_v24 = vld [vmem:[%s2257_s4 + $0x30] sm:$0xff]  ;;  %v29_v26 = vld [vmem:[%s2254_s1 + $0x40] sm:$0xff]  ;;  %v30_v28 = vld [vmem:[%s2254_s1 + $0x48] sm:$0xff] }
  0x19   :  { %1460 = vmatprep.mubr.msk.f32.mxu0 %vm61_vm0, %v25_v20  ;;  %v469_v27 = vld [vmem:[%s2257_s4 + $0x60] sm:$0xff]  ;;  %v31_v29 = vld [vmem:[%s2254_s1 + $0x50] sm:$0xff]  ;;  %v32_v31 = vld [vmem:[%s2254_s1 + $0x58] sm:$0xff] }
  0x1a   :  { %525 = vperm.xlu0 %1608, %v467_v21   ;;  %v465_v30 = vld [vmem:[%s2257_s4 + $0x40] sm:$0xff]  ;;  %v475_v33 = vld [vmem:[%s2257_s4 + $0x90] sm:$0xff]  ;;  %v34_v34 = vld [vmem:[%s2254_s1 + $0x68] sm:$0xff] }
  0x1b   :  { %v33_v32 = vld [vmem:[%s2254_s1 + $0x60] sm:$0xff]  ;;  %v35_v35 = vld [vmem:[%s2254_s1 + $0x70] sm:$0xff]  ;;  %v36_v37 = vld [vmem:[%s2254_s1 + $0x78] sm:$0xff] }
  0x1c   :  { %1461 = vmatmul.mubr.msk.f32.gmra.mrb[4].mxu0 %vm61_vm0, %v26_v22  ;;  %v471_v36 = vld [vmem:[%s2257_s4 + $0x70] sm:$0xff]  ;;  %v37_v38 = vld [vmem:[%s2254_s1 + $0x80] sm:$0xff]  ;;  %v38_v40 = vld [vmem:[%s2254_s1 + $0x88] sm:$0xff] }
  0x1d   :  { %1463 = vmatprep.mubr.msk.f32.mxu0 %vm61_vm0, %v27_v23  ;;  %v477_v39 = vld [vmem:[%s2257_s4 + $0xa0] sm:$0xff]  ;;  %v39_v41 = vld [vmem:[%s2254_s1 + $0x90] sm:$0xff]  ;;  %v40_v43 = vld [vmem:[%s2254_s1 + $0x98] sm:$0xff] }
  0x1e   :  { %505 = vperm.xlu0 %1608, %v463_v24   ;;  %v473_v42 = vld [vmem:[%s2257_s4 + $0x80] sm:$0xff]  ;;  %v479_v45 = vld [vmem:[%s2257_s4 + $0xb0] sm:$0xff]  ;;  %v42_v46 = vld [vmem:[%s2254_s1 + $0xa8] sm:$0xff] }
  0x1f   :  { %v41_v44 = vld [vmem:[%s2254_s1 + $0xa0] sm:$0xff]  ;;  %v43_v47 = vld [vmem:[%s2254_s1 + $0xb0] sm:$0xff]  ;;  %v44_v49 = vld [vmem:[%s2254_s1 + $0xb8] sm:$0xff] }
  0x20   :  { %1464 = vmatmul.mubr.msk.f32.gmra.mrb[6].mxu0 %vm61_vm0, %v28_v25  ;;  %v481_v48 = vld [vmem:[%s2257_s4 + $0xc0] sm:$0xff]  ;;  %v973_v51 = vld [vmem:[%s2257_s4 + $0xd0] sm:$0xff]  ;;  %v46_v52 = vld [vmem:[%s2254_s1 + $0xc8] sm:$0xff] }
  0x21   :  { %1466 = vmatprep.mubr.msk.f32.mxu0 %vm61_vm0, %v29_v26  ;;  %v45_v50 = vld [vmem:[%s2254_s1 + $0xc0] sm:$0xff]  ;;  %v47_v53 = vld [vmem:[%s2254_s1 + $0xd0] sm:$0xff]  ;;  %v48_v55 = vld [vmem:[%s2254_s1 + $0xd8] sm:$0xff] }
  0x22   :  { %535 = vperm.xlu0 %1608, %v469_v27   ;;  %v975_v54 = vld [vmem:[%s2257_s4 + $0xe0] sm:$0xff]  ;;  %v977_v57 = vld [vmem:[%s2257_s4 + $0xf0] sm:$0xff]  ;;  %v50_v58 = vld [vmem:[%s2254_s1 + $0xe8] sm:$0xff] }
  0x23   :  { %v49_v56 = vld [vmem:[%s2254_s1 + $0xe0] sm:$0xff]  ;;  %v51_v59 = vld [vmem:[%s2254_s1 + $0xf0] sm:$0xff]  ;;  %v52_v61 = vld [vmem:[%s2254_s1 + $0xf8] sm:$0xff] }
  0x24   :  { %1467 = vmatmul.mubr.msk.f32.gmra.mrb[8].mxu0 %vm61_vm0, %v30_v28  ;;  %v979_v60 = vld [vmem:[%s2257_s4 + $0x100] sm:$0xff]  ;;  %v1190_v62 = vld [vmem:[%s2257_s4 + $0x110] sm:$0xff]  ;;  %v460_v5 = vld [vmem:[%s2257_s4 + $0x18] sm:$0xff] }
  0x25   :  { %1469 = vmatprep.mubr.msk.f32.mxu0 %vm61_vm0, %v31_v29  ;;  %v1192_v63 = vld [vmem:[%s2257_s4 + $0x120] sm:$0xff]  ;;  %v1194_v0 = vld [vmem:[%s2257_s4 + $0x130] sm:$0xff]  ;;  %v462_v6 = vld [vmem:[%s2257_s4 + $0x28] sm:$0xff] }
  0x26   :  { %515 = vperm.xlu0 %1608, %v465_v30   ;;  %v1196_v1 = vld [vmem:[%s2257_s4 + $0x140] sm:$0xff]  ;;  %v1268_v2 = vld [vmem:[%s2257_s4 + $0x150] sm:$0x1]  ;;  %v468_v7 = vld [vmem:[%s2257_s4 + $0x58] sm:$0xff] }
  0x27   :  { %v435_v3 = vld [vmem:[%s2255_s2] sm:$0xff]  ;;  %v459_v4 = vld [vmem:[%s2257_s4 + $0x10] sm:$0xff]  ;;  %v464_v8 = vld [vmem:[%s2257_s4 + $0x38] sm:$0xff] }
  0x28   :  { %1470 = vmatmul.mubr.msk.f32.gmra.mrb[10].mxu0 %vm61_vm0, %v32_v31  ;;  %1506 = vmatprep.mubr.msk.f32.mxu1 %vm603_vm1, %v435_v3  ;;  %v470_v9 = vld [vmem:[%s2257_s4 + $0x68] sm:$0xff]  ;;  %v476_v11 = vld [vmem:[%s2257_s4 + $0x98] sm:$0xff] }
  0x29   :  { %1472 = vmatprep.mubr.msk.f32.mxu0 %vm61_vm0, %v33_v32  ;;  %485 = vperm.xlu1 %1609, %v459_v4   ;;  %v466_v10 = vld [vmem:[%s2257_s4 + $0x48] sm:$0xff]  ;;  %v472_v12 = vld [vmem:[%s2257_s4 + $0x78] sm:$0xff] }
  0x2a   :  { %565 = vperm.xlu0 %1608, %v475_v33   ;;  %v478_v15 = vld [vmem:[%s2257_s4 + $0xa8] sm:$0xff]  ;;  %v480_v21 = vld [vmem:[%s2257_s4 + $0xb8] sm:$0xff] }
  0x2b   :  { %v474_v18 = vld [vmem:[%s2257_s4 + $0x88] sm:$0xff]  ;;  %v974_v27 = vld [vmem:[%s2257_s4 + $0xd8] sm:$0xff] }
  0x2c   :  { %1473 = vmatmul.mubr.msk.f32.gmra.mrb[12].mxu0 %vm61_vm0, %v34_v34  ;;  %v482_v24 = vld [vmem:[%s2257_s4 + $0xc8] sm:$0xff]  ;;  %v978_v33 = vld [vmem:[%s2257_s4 + $0xf8] sm:$0xff] }
  0x2d   :  { %1475 = vmatprep.mubr.msk.f32.mxu0 %vm61_vm0, %v35_v35  ;;  %490 = vperm.xlu1 %1609, %v460_v5   ;;  %v976_v30 = vld [vmem:[%s2257_s4 + $0xe8] sm:$0xff] }
  0x2e   :  { %545 = vperm.xlu0 %1608, %v471_v36   ;;  %v980_v36 = vld [vmem:[%s2257_s4 + $0x108] sm:$0xff] }
  0x30   :  { %1476 = vmatmul.mubr.msk.f32.gmra.mrb[14].mxu0 %vm61_vm0, %v36_v37 }
  0x31   :  { %1478 = vmatprep.mubr.msk.f32.mxu0 %vm61_vm0, %v37_v38  ;;  %500 = vperm.xlu1 %1609, %v462_v6  }
  0x32   :  { %575 = vperm.xlu0 %1608, %v477_v39  }
  0x34   :  { %1479 = vmatmul.mubr.msk.f32.gmra.mrb[16].mxu0 %vm61_vm0, %v38_v40  ;;  %v1191_v40 = vld [vmem:[%s2257_s4 + $0x118] sm:$0xff] }
  0x35   :  { %1481 = vmatprep.mubr.msk.f32.mxu0 %vm61_vm0, %v39_v41  ;;  %530 = vperm.xlu1 %1609, %v468_v7  }
  0x36   :  { %555 = vperm.xlu0 %1608, %v473_v42  }
  0x38   :  { %1482 = vmatmul.mubr.msk.f32.gmra.mrb[18].mxu0 %vm61_vm0, %v40_v43 }
  0x39   :  { %1484 = vmatprep.mubr.msk.f32.mxu0 %vm61_vm0, %v41_v44  ;;  %510 = vperm.xlu1 %1609, %v464_v8  }
  0x3a   :  { %585 = vperm.xlu0 %1608, %v479_v45   ;;  %v1193_v45 = vld [vmem:[%s2257_s4 + $0x128] sm:$0xff] }
  0x3c   :  { %1485 = vmatmul.mubr.msk.f32.gmra.mrb[20].mxu0 %vm61_vm0, %v42_v46 }
  0x3d   :  { %1487 = vmatprep.mubr.msk.f32.mxu0 %vm61_vm0, %v43_v47  ;;  %540 = vperm.xlu1 %1609, %v470_v9  }
  0x3e   :  { %595 = vperm.xlu0 %1608, %v481_v48  }
  0x40   :  { %1488 = vmatmul.mubr.msk.f32.gmra.mrb[22].mxu0 %vm61_vm0, %v44_v49 }
  0x41   :  { %1490 = vmatprep.mubr.msk.f32.mxu0 %vm61_vm0, %v45_v50  ;;  %520 = vperm.xlu1 %1609, %v466_v10   ;;  %v1195_v50 = vld [vmem:[%s2257_s4 + $0x138] sm:$0xff] }
  0x42   :  { %983 = vperm.xlu0 %1608, %v973_v51  }
  0x44   :  { %1491 = vmatmul.mubr.msk.f32.gmra.mrb[24].mxu0 %vm61_vm0, %v46_v52 }
  0x45   :  { %1493 = vmatprep.mubr.msk.f32.mxu0 %vm61_vm0, %v47_v53  ;;  %570 = vperm.xlu1 %1609, %v476_v11  }
  0x46   :  { %993 = vperm.xlu0 %1608, %v975_v54  }
  0x48   :  { %1494 = vmatmul.mubr.msk.f32.gmra.mrb[26].mxu0 %vm61_vm0, %v48_v55  ;;  %v1197_v55 = vld [vmem:[%s2257_s4 + $0x148] sm:$0xff] }
  0x49   :  { %1496 = vmatprep.mubr.msk.f32.mxu0 %vm61_vm0, %v49_v56  ;;  %550 = vperm.xlu1 %1609, %v472_v12  }
  0x4a   :  { %1003 = vperm.xlu0 %1608, %v977_v57  }
  0x4c   :  { %1497 = vmatmul.mubr.msk.f32.gmra.mrb[28].mxu0 %vm61_vm0, %v50_v58 }
  0x4d   :  { %1499 = vmatprep.mubr.msk.f32.mxu0 %vm61_vm0, %v51_v59  ;;  %580 = vperm.xlu1 %1609, %v478_v15  }
  0x4e   :  { %1013 = vperm.xlu0 %1608, %v979_v60  }
  0x50   :  { %1500 = vmatmul.mubr.msk.f32.gmra.mrb[30].mxu0 %vm61_vm0, %v52_v61 }
  0x51   :  { %560 = vperm.xlu1 %1609, %v474_v18  }
  0x52   :  { %1200 = vperm.xlu0 %1608, %v1190_v62  }
  0x55   :  { %590 = vperm.xlu1 %1609, %v480_v21  }
  0x56   :  { %1210 = vperm.xlu0 %1608, %v1192_v63  }
  0x59   :  { %600 = vperm.xlu1 %1609, %v482_v24  }
  0x5a   :  { %1220 = vperm.xlu0 %1608, %v1194_v0  }
  0x5d   :  { %988 = vperm.xlu1 %1609, %v974_v27  }
  0x5e   :  { %1230 = vperm.xlu0 %1608, %v1196_v1  }
  0x61   :  { %998 = vperm.xlu1 %1609, %v976_v30  }
  0x62   :  { %1271 = vperm.xlu0 %1608, %v1268_v2  }
  0x65   :  { %1008 = vperm.xlu1 %1609, %v978_v33  }
  0x69   :  { %1018 = vperm.xlu1 %1609, %v980_v36   ;;  %v436_v36 = vld [vmem:[%s2255_s2 + $0x8] sm:$0xff] }
  0x6d   :  { %1205 = vperm.xlu1 %1609, %v1191_v40   ;;  %v440_v40 = vld [vmem:[%s2255_s2 + $0x28] sm:$0xff] }
  0x71   :  { %1215 = vperm.xlu1 %1609, %v1193_v45   ;;  %v445_v45 = vld [vmem:[%s2255_s2 + $0x50] sm:$0xff] }
  0x75   :  { %1225 = vperm.xlu1 %1609, %v1195_v50   ;;  %v450_v50 = vld [vmem:[%s2255_s2 + $0x78] sm:$0xff] }
  0x79   :  { %1235 = vperm.xlu1 %1609, %v1197_v55   ;;  %v455_v55 = vld [vmem:[%s2255_s2 + $0xa0] sm:$0xff] }
  0x84   :  { %v418_v15 = vpop.permute.xlu0 %417 }
  0xe7   :  { %v1456_v13 = vpop.f32.mrb[0].mxu0 }
  0xe8   :  { %v224_v14 = vpop.f32.mrb[1].mxu0 }
  0xeb   :  { %v2020_v16 = vpop.f32.mrb[2].mxu0 }
  0xec   :  { %v2022_v17 = vpop.f32.mrb[3].mxu0 }
  0xef   :  { %v2027_v19 = vpop.f32.mrb[4].mxu0 }
  0xf0   :  { %v2029_v20 = vpop.f32.mrb[5].mxu0 }
  0xf3   :  { %v2034_v22 = vpop.f32.mrb[6].mxu0 }
  0xf4   :  { %v2036_v23 = vpop.f32.mrb[7].mxu0 }
  0xf7   :  { %v1468_v25 = vpop.f32.mrb[8].mxu0 }
  0xf8   :  { %v264_v26 = vpop.f32.mrb[9].mxu0 }
  0xfb   :  { %v1471_v28 = vpop.f32.mrb[10].mxu0 }
  0xfc   :  { %v274_v29 = vpop.f32.mrb[11].mxu0 }
  0xff   :  { %v1474_v31 = vpop.f32.mrb[12].mxu0 }
 0x100   :  { %v284_v32 = vpop.f32.mrb[13].mxu0 }
 0x103   :  { %v1477_v34 = vpop.f32.mrb[14].mxu0 }
 0x104   :  { %v294_v35 = vpop.f32.mrb[15].mxu0 }
 0x107   :  { %v1480_v37 = vpop.f32.mrb[16].mxu0 }
 0x108   :  { %v384_v38 = vmax.f32 %v1456_v13, %v1480_v37  ;;  %v304_v39 = vpop.f32.mrb[17].mxu0  ;;  %v437_v37 = vld [vmem:[%s2255_s2 + $0x10] sm:$0xff] }
 0x109   :  { %v383_v41 = vmax.f32 %v224_v14, %v304_v39  ;;  %v439_v39 = vld [vmem:[%s2255_s2 + $0x20] sm:$0xff] }
 0x10b   :  { %v1483_v42 = vpop.f32.mrb[18].mxu0 }
 0x10c   :  { %v386_v43 = vmax.f32 %v2020_v16, %v1483_v42  ;;  %v314_v44 = vpop.f32.mrb[19].mxu0  ;;  %v442_v42 = vld [vmem:[%s2255_s2 + $0x38] sm:$0xff] }
 0x10d   :  { %v385_v46 = vmax.f32 %v2022_v17, %v314_v44  ;;  %v444_v44 = vld [vmem:[%s2255_s2 + $0x48] sm:$0xff] }
 0x10f   :  { %v1486_v47 = vpop.f32.mrb[20].mxu0 }
 0x110   :  { %v388_v48 = vmax.f32 %v2027_v19, %v1486_v47  ;;  %v324_v49 = vpop.f32.mrb[21].mxu0  ;;  %v447_v47 = vld [vmem:[%s2255_s2 + $0x60] sm:$0xff] }
 0x111   :  { %v387_v51 = vmax.f32 %v2029_v20, %v324_v49  ;;  %v449_v49 = vld [vmem:[%s2255_s2 + $0x70] sm:$0xff] }
 0x113   :  { %v1489_v52 = vpop.f32.mrb[22].mxu0 }
 0x114   :  { %v390_v53 = vmax.f32 %v2034_v22, %v1489_v52  ;;  %v334_v54 = vpop.f32.mrb[23].mxu0  ;;  %v452_v52 = vld [vmem:[%s2255_s2 + $0x88] sm:$0xff] }
 0x115   :  { %v389_v56 = vmax.f32 %v2036_v23, %v334_v54  ;;  %v423_v23 = vpop.permute.xlu0 %422  ;;  %v454_v54 = vld [vmem:[%s2255_s2 + $0x98] sm:$0xff] }
 0x117   :  { %v1492_v57 = vpop.f32.mrb[24].mxu0 }
 0x118   :  { %v392_v58 = vmax.f32 %v1468_v25, %v1492_v57  ;;  %v344_v59 = vpop.f32.mrb[25].mxu0  ;;  %v457_v57 = vld [vmem:[%s2255_s2 + $0xb0] sm:$0xff] }
 0x119   :  { %v391_v60 = vmax.f32 %v264_v26, %v344_v59  ;;  %v965_v59 = vld [vmem:[%s2256_s3] sm:$0xff] }
 0x11a   :  { %v400_v61 = vmax.f32 %v384_v38, %v392_v58  ;;  %v438_v38 = vld [vmem:[%s2255_s2 + $0x18] sm:$0xff] }
 0x11b   :  { %v399_v62 = vmax.f32 %v383_v41, %v391_v60  ;;  %v1495_v63 = vpop.f32.mrb[26].mxu0  ;;  %v441_v41 = vld [vmem:[%s2255_s2 + $0x30] sm:$0xff]  ;;  %v458_v58 = vld [vmem:[%s2255_s2 + $0xb8] sm:$0xff]  ;;  %v486_v60 = vpop.permute.xlu1 %485 }
 0x11c   :  { %v394_v0 = vmax.f32 %v1471_v28, %v1495_v63  ;;  %v354_v1 = vpop.f32.mrb[27].mxu0  ;;  %v496_v63 = vpop.permute.xlu0 %495 }
 0x11d   :  { %v393_v2 = vmax.f32 %v274_v29, %v354_v1 }
 0x11e   :  { %v402_v3 = vmax.f32 %v386_v43, %v394_v0  ;;  %v443_v43 = vld [vmem:[%s2255_s2 + $0x40] sm:$0xff] }
 0x11f   :  { %v401_v4 = vmax.f32 %v385_v46, %v393_v2  ;;  %v1498_v5 = vpop.f32.mrb[28].mxu0  ;;  %v446_v46 = vld [vmem:[%s2255_s2 + $0x58] sm:$0xff] }
 0x120   :  { %v396_v6 = vmax.f32 %v1474_v31, %v1498_v5  ;;  %v364_v7 = vpop.f32.mrb[29].mxu0  ;;  %v526_v1 = vpop.permute.xlu0 %525 }
 0x121   :  { %v395_v8 = vmax.f32 %v284_v32, %v364_v7 }
 0x122   :  { %v404_v9 = vmax.f32 %v388_v48, %v396_v6  ;;  %v448_v48 = vld [vmem:[%s2255_s2 + $0x68] sm:$0xff] }
 0x123   :  { %v403_v10 = vmax.f32 %v387_v51, %v395_v8  ;;  %v1501_v11 = vpop.f32.mrb[30].mxu0  ;;  %v451_v51 = vld [vmem:[%s2255_s2 + $0x80] sm:$0xff] }
 0x124   :  { %v408_v12 = vmax.f32 %v400_v61, %v404_v9  ;;  %v398_v13 = vmax.f32 %v1477_v34, %v1501_v11  ;;  %v374_v14 = vpop.f32.mrb[31].mxu0  ;;  %v491_v61 = vpop.permute.xlu1 %490 }
 0x125   :  { %v407_v16 = vmax.f32 %v399_v62, %v403_v10  ;;  %v397_v17 = vmax.f32 %v294_v35, %v374_v14 }
 0x126   :  { %v406_v18 = vmax.f32 %v390_v53, %v398_v13  ;;  %v453_v53 = vld [vmem:[%s2255_s2 + $0x90] sm:$0xff] }
 0x127   :  { %v405_v19 = vmax.f32 %v389_v56, %v397_v17  ;;  %v456_v56 = vld [vmem:[%s2255_s2 + $0xa8] sm:$0xff] }
 0x128   :  { %v410_v20 = vmax.f32 %v402_v3, %v406_v18  ;;  %v501_v62 = vpop.permute.xlu1 %500  ;;  %v506_v3 = vpop.permute.xlu0 %505 }
 0x129   :  { %v409_v21 = vmax.f32 %v401_v4, %v405_v19 }
 0x12a   :  { %v412_v22 = vmax.f32 %v408_v12, %v410_v20 }
 0x12b   :  { %v411_v24 = vmax.f32 %v407_v16, %v409_v21 }
 0x12c   :  { %v426_v25 = vadd.f32 %v423_v23, %v412_v22  ;;  %v531_v0 = vpop.permute.xlu1 %530  ;;  %v536_v5 = vpop.permute.xlu0 %535 }
 0x12d   :  { %v425_v26 = vadd.f32 %v418_v15, %v411_v24 }
 0x12e   :  { %v428_v27 = vmul.f32 0.5, %v426_v25 }
 0x12f   :  { %v427_v28 = vmul.f32 0.5, %v425_v26 }
 0x130   :  { %1610 = vtanh.f32 %v428_v27  ;;  %v511_v2 = vpop.permute.xlu1 %510  ;;  %v516_v12 = vpop.permute.xlu0 %515 }
 0x131   :  { %1612 = vtanh.f32 %v427_v28 }
 0x134   :  { %v541_v4 = vpop.permute.xlu1 %540  ;;  %v2169_v23 = vpop.permute.xlu0 %565 }
 0x138   :  { %v521_v9 = vpop.permute.xlu1 %520 }
 0x13a   :  { %v1611_v29 = vpop.eup %1610 }
 0x13b   :  { %v1613_v30 = vpop.eup %1612  ;;  %v432_v31 = vadd.f32 1.0, %v1611_v29 }
 0x13c   :  { %v431_v32 = vadd.f32 1.0, %v1613_v30  ;;  %v2167_v21 = vpop.permute.xlu1 %570 }
 0x13d   :  { %v434_v33 = vmul.f32 0.5, %v432_v31 }
 0x13e   :  { %v433_v34 = vmul.f32 0.5, %v431_v32 }
 0x140   :  { %v1586_v35 = vpack.c.bf16 %v434_v33, %v433_v34  ;;  %v551_v31 = vpop.permute.xlu1 %550  ;;  %v546_v33 = vpop.permute.xlu0 %545 }
 0x142   :  { %1587 = vmatprep.subr.bf16.mxu1 %v1586_v35 }
 0x143   :  { %1589 = vmatpush3.bf16.msra.mxu1 %v1586_v35 }
 0x146   :  { %1507 = vmatmul.mubr.msk.f32.vlgmr.msra.gmra.mrb[0].mxu1 %vm603_vm1, %v436_v36 }
 0x147   :  { %1509 = vmatprep.mubr.msk.f32.mxu1 %vm603_vm1, %v437_v37 }
 0x14a   :  { %1510 = vmatmul.mubr.msk.f32.gmra.mrb[2].mxu1 %vm603_vm1, %v438_v38 }
 0x14b   :  { %1512 = vmatprep.mubr.msk.f32.mxu1 %vm603_vm1, %v439_v39 }
 0x14e   :  { %1513 = vmatmul.mubr.msk.f32.gmra.mrb[4].mxu1 %vm603_vm1, %v440_v40 }
 0x14f   :  { %1515 = vmatprep.mubr.msk.f32.mxu1 %vm603_vm1, %v441_v41 }
 0x152   :  { %1516 = vmatmul.mubr.msk.f32.gmra.mrb[6].mxu1 %vm603_vm1, %v442_v42 }
 0x153   :  { %1518 = vmatprep.mubr.msk.f32.mxu1 %vm603_vm1, %v443_v43 }
 0x156   :  { %1519 = vmatmul.mubr.msk.f32.gmra.mrb[8].mxu1 %vm603_vm1, %v444_v44  ;;  %v581_v44 = vpop.permute.xlu1 %580 }
 0x157   :  { %1521 = vmatprep.mubr.msk.f32.mxu1 %vm603_vm1, %v445_v45 }
 0x15a   :  { %1522 = vmatmul.mubr.msk.f32.gmra.mrb[10].mxu1 %vm603_vm1, %v446_v46 }
 0x15b   :  { %1524 = vmatprep.mubr.msk.f32.mxu1 %vm603_vm1, %v447_v47  ;;  %v576_v47 = vpop.permute.xlu0 %575 }
 0x15e   :  { %1525 = vmatmul.mubr.msk.f32.gmra.mrb[12].mxu1 %vm603_vm1, %v448_v48 }
 0x15f   :  { %1527 = vmatprep.mubr.msk.f32.mxu1 %vm603_vm1, %v449_v49 }
 0x162   :  { %1528 = vmatmul.mubr.msk.f32.gmra.mrb[14].mxu1 %vm603_vm1, %v450_v50 }
 0x163   :  { %1530 = vmatprep.mubr.msk.f32.mxu1 %vm603_vm1, %v451_v51 }
 0x166   :  { %1531 = vmatmul.mubr.msk.f32.gmra.mrb[16].mxu1 %vm603_vm1, %v452_v52 }
 0x167   :  { %1533 = vmatprep.mubr.msk.f32.mxu1 %vm603_vm1, %v453_v53 }
 0x16a   :  { %1534 = vmatmul.mubr.msk.f32.gmra.mrb[18].mxu1 %vm603_vm1, %v454_v54 }
 0x16b   :  { %1536 = vmatprep.mubr.msk.f32.mxu1 %vm603_vm1, %v455_v55 }
 0x16e   :  { %1537 = vmatmul.mubr.msk.f32.gmra.mrb[20].mxu1 %vm603_vm1, %v456_v56 }
 0x16f   :  { %1539 = vmatprep.mubr.msk.f32.mxu1 %vm603_vm1, %v457_v57 }
 0x172   :  { %1540 = vmatmul.mubr.msk.f32.gmra.mrb[22].mxu1 %vm603_vm1, %v458_v58  ;;  %v561_v58 = vpop.permute.xlu1 %560 }
 0x173   :  { %1558 = vmatprep.mubr.msk.f32.mxu1 %vm61_vm0, %v965_v59 }
 0x219   :  { %v1508_v6 = vpop.f32.mrb[0].mxu1 }
 0x21a   :  { %v742_v7 = vpop.f32.mrb[1].mxu1  ;;  %v748_v8 = vadd.f32 %v1508_v6, %v491_v61 }
 0x21b   :  { %v743_v10 = vadd.f32 %v742_v7, %v486_v60 }
 0x21c   :  { %v862_v14 = vmul.f32 0.5, %v748_v8 }
 0x21d   :  { %v1511_v11 = vpop.f32.mrb[2].mxu1  ;;  %v861_v16 = vmul.f32 0.5, %v743_v10 }
 0x21e   :  { %v752_v13 = vpop.f32.mrb[3].mxu1  ;;  %v758_v15 = vadd.f32 %v1511_v11, %v501_v62  ;;  %1614 = vtanh.f32 %v862_v14 }
 0x21f   :  { %v753_v17 = vadd.f32 %v752_v13, %v496_v63  ;;  %1616 = vtanh.f32 %v861_v16  ;;  %v556_v63 = vpop.permute.xlu0 %555 }
 0x220   :  { %v864_v24 = vmul.f32 0.5, %v758_v15 }
 0x221   :  { %v1514_v18 = vpop.f32.mrb[4].mxu1  ;;  %v863_v25 = vmul.f32 0.5, %v753_v17 }
 0x222   :  { %v768_v19 = vadd.f32 %v1514_v18, %v511_v2  ;;  %v762_v20 = vpop.f32.mrb[5].mxu1  ;;  %1618 = vtanh.f32 %v864_v24 }
 0x223   :  { %v763_v22 = vadd.f32 %v762_v20, %v506_v3  ;;  %1620 = vtanh.f32 %v863_v25 }
 0x224   :  { %v866_v27 = vmul.f32 0.5, %v768_v19 }
 0x225   :  { %v1517_v26 = vpop.f32.mrb[6].mxu1  ;;  %v865_v29 = vmul.f32 0.5, %v763_v22 }
 0x226   :  { %v772_v28 = vpop.f32.mrb[7].mxu1  ;;  %v778_v30 = vadd.f32 %v1517_v26, %v521_v9  ;;  %1622 = vtanh.f32 %v866_v27 }
 0x227   :  { %1624 = vtanh.f32 %v865_v29  ;;  %v773_v37 = vadd.f32 %v772_v28, %v516_v12 }
 0x228   :  { %v868_v36 = vmul.f32 0.5, %v778_v30  ;;  %v1615_v40 = vpop.eup %1614 }
 0x229   :  { %v1520_v32 = vpop.f32.mrb[8].mxu1  ;;  %v1617_v43 = vpop.eup %1616  ;;  %v867_v45 = vmul.f32 0.5, %v773_v37  ;;  %v878_v48 = vadd.f32 1.0, %v1615_v40 }
 0x22a   :  { %v788_v34 = vadd.f32 %v1520_v32, %v531_v0  ;;  %v782_v35 = vpop.f32.mrb[9].mxu1  ;;  %v877_v51 = vadd.f32 1.0, %v1617_v43 }
 0x22b   :  { %v783_v38 = vadd.f32 %v782_v35, %v526_v1  ;;  %v886_v59 = vmul.f32 0.5, %v878_v48 }
 0x22c   :  { %1626 = vtanh.f32 %v788_v34  ;;  %v1619_v50 = vpop.eup %1618  ;;  %v885_v0 = vmul.f32 0.5, %v877_v51 }
 0x22d   :  { %1628 = vtanh.f32 %v783_v38  ;;  %v1523_v39 = vpop.f32.mrb[10].mxu1  ;;  %v1621_v54 = vpop.eup %1620  ;;  %v880_v60 = vadd.f32 1.0, %v1619_v50 }
 0x22e   :  { %v798_v41 = vadd.f32 %v1523_v39, %v541_v4  ;;  %v792_v42 = vpop.f32.mrb[11].mxu1  ;;  %1630 = vtanh.f32 %v868_v36  ;;  %v879_v1 = vadd.f32 1.0, %v1621_v54  ;;  %v586_v36 = vpop.permute.xlu0 %585 }
 0x22f   :  { %v793_v46 = vadd.f32 %v792_v42, %v536_v5  ;;  %v888_v9 = vmul.f32 0.5, %v880_v60 }
 0x230   :  { %1632 = vtanh.f32 %v798_v41  ;;  %v1623_v56 = vpop.eup %1622  ;;  %v887_v13 = vmul.f32 0.5, %v879_v1 }
 0x231   :  { %1634 = vtanh.f32 %v793_v46  ;;  %v1526_v49 = vpop.f32.mrb[12].mxu1  ;;  %v1625_v57 = vpop.eup %1624  ;;  %v882_v10 = vadd.f32 1.0, %v1623_v56 }
 0x232   :  { %v808_v52 = vadd.f32 %v1526_v49, %v551_v31  ;;  %v802_v53 = vpop.f32.mrb[13].mxu1  ;;  %1636 = vtanh.f32 %v867_v45  ;;  %v881_v14 = vadd.f32 1.0, %v1625_v57 }
 0x233   :  { %v803_v55 = vadd.f32 %v802_v53, %v546_v33  ;;  %v890_v25 = vmul.f32 0.5, %v882_v10  ;;  %v596_v53 = vpop.permute.xlu0 %595 }
 0x234   :  { %1638 = vtanh.f32 %v808_v52  ;;  %v889_v30 = vmul.f32 0.5, %v881_v14 }
 0x235   :  { %1640 = vtanh.f32 %v803_v55  ;;  %v1529_v61 = vpop.f32.mrb[14].mxu1 }
 0x236   :  { %v1627_v62 = vpop.eup %1626  ;;  %v818_v2 = vadd.f32 %v1529_v61, %v561_v58  ;;  %v812_v3 = vpop.f32.mrb[15].mxu1 }
 0x237   :  { %v1629_v4 = vpop.eup %1628  ;;  %v934_v5 = vmul.f32 %v1627_v62, %v886_v59  ;;  %v813_v6 = vadd.f32 %v812_v3, %v556_v63 }
 0x238   :  { %v933_v7 = vmul.f32 %v1629_v4, %v885_v0  ;;  %1642 = vtanh.f32 %v818_v2  ;;  %v1631_v8 = vpop.eup %1630 }
 0x239   :  { %v1532_v11 = vpop.f32.mrb[16].mxu1  ;;  %1644 = vtanh.f32 %v813_v6  ;;  %v884_v26 = vadd.f32 1.0, %v1631_v8 }
 0x23a   :  { %v1633_v12 = vpop.eup %1632  ;;  %v828_v15 = vadd.f32 %v1532_v11, %v2167_v21  ;;  %v822_v16 = vpop.f32.mrb[17].mxu1  ;;  %1646 = vtanh.f32 %v934_v5 }
 0x23b   :  { %v1635_v17 = vpop.eup %1634  ;;  %v936_v18 = vmul.f32 %v1633_v12, %v888_v9  ;;  %v823_v19 = vadd.f32 %v822_v16, %v2169_v23  ;;  %v591_v21 = vpop.permute.xlu1 %590  ;;  %v892_v39 = vmul.f32 0.5, %v884_v26 }
 0x23c   :  { %v935_v20 = vmul.f32 %v1635_v17, %v887_v13  ;;  %v902_v22 = vmul.f32 0.5, %v828_v15  ;;  %v1637_v24 = vpop.eup %1636 }
 0x23d   :  { %v901_v27 = vmul.f32 0.5, %v823_v19  ;;  %v1535_v28 = vpop.f32.mrb[18].mxu1  ;;  %v883_v37 = vadd.f32 1.0, %v1637_v24 }
 0x23e   :  { %v1639_v29 = vpop.eup %1638  ;;  %v838_v31 = vadd.f32 %v1535_v28, %v581_v44  ;;  %v832_v32 = vpop.f32.mrb[19].mxu1  ;;  %1648 = vtanh.f32 %v902_v22 }
 0x23f   :  { %v1641_v33 = vpop.eup %1640  ;;  %v938_v34 = vmul.f32 %v1639_v29, %v890_v25  ;;  %v833_v35 = vadd.f32 %v832_v32, %v576_v47  ;;  %1650 = vtanh.f32 %v901_v27  ;;  %v891_v48 = vmul.f32 0.5, %v883_v37  ;;  %v601_v50 = vpop.permute.xlu1 %600 }
 0x240   :  { %v937_v23 = vmul.f32 %v1641_v33, %v889_v30  ;;  %v904_v38 = vmul.f32 0.5, %v838_v31  ;;  %1652 = vtanh.f32 %v933_v7 }
 0x241   :  { %v903_v40 = vmul.f32 0.5, %v833_v35  ;;  %v1538_v41 = vpop.f32.mrb[20].mxu1  ;;  %1654 = vtanh.f32 %v936_v18 }
 0x242   :  { %v1643_v42 = vpop.eup %1642  ;;  %v848_v43 = vadd.f32 %v1538_v41, %v591_v21  ;;  %v842_v45 = vpop.f32.mrb[21].mxu1  ;;  %1656 = vtanh.f32 %v904_v38 }
 0x243   :  { %v940_v44 = vmul.f32 %v1643_v42, %v892_v39  ;;  %v843_v46 = vadd.f32 %v842_v45, %v586_v36  ;;  %1658 = vtanh.f32 %v903_v40  ;;  %v1645_v47 = vpop.eup %1644 }
 0x244   :  { %v906_v49 = vmul.f32 0.5, %v848_v43  ;;  %1660 = vtanh.f32 %v935_v20  ;;  %v939_v54 = vmul.f32 %v1645_v47, %v891_v48  ;;  %v1647_v58 = vpop.eup %1646  ;;  %v967_v47 = vld [vmem:[%s2256_s3 + $0x10] sm:$0xff] }
 0x245   :  { %v905_v51 = vmul.f32 0.5, %v843_v46  ;;  %v1541_v52 = vpop.f32.mrb[22].mxu1 }
 0x246   :  { %1662 = vtanh.f32 %v906_v49  ;;  %v858_v55 = vadd.f32 %v1541_v52, %v601_v50  ;;  %v852_v56 = vpop.f32.mrb[23].mxu1  ;;  %v966_v49 = vld [vmem:[%s2256_s3 + $0x8] sm:$0xff]  ;;  %v968_v50 = vld [vmem:[%s2256_s3 + $0x18] sm:$0xff] }
 0x247   :  { %1664 = vtanh.f32 %v905_v51  ;;  %v853_v57 = vadd.f32 %v852_v56, %v596_v53  ;;  %v969_v51 = vld [vmem:[%s2256_s3 + $0x20] sm:$0xff]  ;;  %v970_v52 = vld [vmem:[%s2256_s3 + $0x28] sm:$0xff]  ;;  %v971_v53 = vld [vmem:[%s2256_s3 + $0x30] sm:$0xff]  ;;  %v989_v56 = vpop.permute.xlu1 %988 }
 0x248   :  { %1666 = vtanh.f32 %v938_v34  ;;  %v908_v59 = vmul.f32 0.5, %v858_v55  ;;  %v1649_v60 = vpop.eup %1648  ;;  %v984_v55 = vpop.permute.xlu0 %983 }
 0x249   :  { %1668 = vtanh.f32 %v937_v23  ;;  %v907_v61 = vmul.f32 0.5, %v853_v57  ;;  %v1651_v62 = vpop.eup %1650  ;;  %v918_v63 = vadd.f32 1.0, %v1649_v60 }
 0x24a   :  { %1670 = vtanh.f32 %v908_v59  ;;  %v1653_v0 = vpop.eup %1652  ;;  %v917_v1 = vadd.f32 1.0, %v1651_v62 }
 0x24b   :  { %1672 = vtanh.f32 %v907_v61  ;;  %v1655_v2 = vpop.eup %1654  ;;  %v926_v3 = vmul.f32 0.5, %v918_v63 }
 0x24c   :  { %v1657_v4 = vpop.eup %1656  ;;  %v925_v5 = vmul.f32 0.5, %v917_v1  ;;  %1674 = vtanh.f32 %v940_v44  ;;  %v994_v57 = vpop.permute.xlu0 %993 }
 0x24d   :  { %v1659_v6 = vpop.eup %1658  ;;  %v950_v7 = vmul.f32 %v1647_v58, %v926_v3  ;;  %v920_v8 = vadd.f32 1.0, %v1657_v4  ;;  %1676 = vtanh.f32 %v939_v54  ;;  %v972_v54 = vld [vmem:[%s2256_s3 + $0x38] sm:$0xff]  ;;  %v999_v58 = vpop.permute.xlu1 %998  ;;  %s1737_s3 = smov [#allocation2]  }
 0x24e   :  { %v1661_v9 = vpop.eup %1660  ;;  %v949_v10 = vmul.f32 %v1653_v0, %v925_v5  ;;  %v919_v11 = vadd.f32 1.0, %v1659_v6  ;;  %s1284_s7 = sshll.u32 %s1737_s3, 4  ;;  %s1285_s7 = int_to_ptr.vmem [resolvable:$true] %s1284_s7 }
 0x24f   :  { %1678 = vtanh.f32 %v950_v7  ;;  %v928_v13 = vmul.f32 0.5, %v920_v8  ;;  %s1712_s8 = scalar_lea.vmem %s1285_s7, 16  ;;  %s1716_s9 = scalar_lea.vmem %s1285_s7, 32 }
 0x250   :  { %v1663_v12 = vpop.eup %1662  ;;  %1680 = vtanh.f32 %v949_v10  ;;  %v927_v15 = vmul.f32 0.5, %v919_v11  ;;  %v1004_v63 = vpop.permute.xlu0 %1003  ;;  %p1713_p0 = scmp.ne.s32.totalorder %s1285_s7, %s1712_s8  ;;  %p1717_p1 = scmp.lt.s32.totalorder %s1285_s7, %s1285_s7 }
 0x251   :  { %v1665_v14 = vpop.eup %1664  ;;  %v922_v16 = vadd.f32 1.0, %v1663_v12  ;;  %v952_v18 = vmul.f32 %v1655_v2, %v928_v13  ;;  %v1009_v1 = vpop.permute.xlu1 %1008  ;;  %p1718_p2 = scmp.lt.s32.totalorder %s1716_s9, %s1712_s8 }
 0x252   :  { %v1667_v17 = vpop.eup %1666  ;;  %v921_v19 = vadd.f32 1.0, %v1665_v14  ;;  %v951_v22 = vmul.f32 %v1661_v9, %v927_v15 }
 0x253   :  { %v1669_v20 = vpop.eup %1668  ;;  %v930_v24 = vmul.f32 0.5, %v922_v16  ;;  %1682 = vtanh.f32 %v952_v18  ;;  %p1719_p3 = por %p1718_p2, %p1717_p1 }
 0x254   :  { %v1671_v25 = vpop.eup %1670  ;;  %v929_v26 = vmul.f32 0.5, %v921_v19  ;;  %1684 = vtanh.f32 %v951_v22  ;;  %v1014_v12 = vpop.permute.xlu0 %1013 }
 0x255   :  { %v1673_v27 = vpop.eup %1672  ;;  %v954_v28 = vmul.f32 %v1667_v17, %v930_v24  ;;  %v924_v29 = vadd.f32 1.0, %v1671_v25  ;;  %v1019_v13 = vpop.permute.xlu1 %1018  ;;  %p1720_p4 = pnand %p1719_p3, %p1713_p0 }
 0x256   :  { %v953_v30 = vmul.f32 %v1669_v20, %v929_v26  ;;  %v923_v31 = vadd.f32 1.0, %v1673_v27  ;;  %v1675_v33 = vpop.eup %1674 }
 0x257   :  { %1686 = vtanh.f32 %v954_v28  ;;  %v932_v32 = vmul.f32 0.5, %v924_v29  ;;  %v1677_v34 = vpop.eup %1676 }
 0x258   :  { %1688 = vtanh.f32 %v953_v30  ;;  %v931_v21 = vmul.f32 0.5, %v923_v31  ;;  %v1201_v26 = vpop.permute.xlu0 %1200 }
 0x259   :  { %v956_v35 = vmul.f32 %v1675_v33, %v932_v32  ;;  %v2173_v36 = vpop.eup %1678  ;;  %v1206_v27 = vpop.permute.xlu1 %1205 }
 0x25a   :  { %v955_v37 = vmul.f32 %v1677_v34, %v931_v21  ;;  %v2175_v23 = vpop.eup %1680 }
 0x25b   :  { %1690 = vtanh.f32 %v956_v35  ;;  %v1590_v38 = vpack.c.bf16 %v2173_v36, %v2175_v23 }
 0x25c   :  { %1692 = vtanh.f32 %v955_v37 }
 0x25d   :  { %v2179_v39 = vpop.eup %1682  ;;  %1591 = vmatprep.subr.bf16.mxu1 %v1590_v38 }
 0x25e   :  { %v2181_v40 = vpop.eup %1684  ;;  %1593 = vmatpush3.bf16.msra.mxu1 %v1590_v38 }
 0x25f   :  { %v1594_v41 = vpack.c.bf16 %v2179_v39, %v2181_v40 }
 0x261   :  { %v2185_v42 = vpop.eup %1686  ;;  %1595 = vmatprep.subr.bf16.mxu1 %v1594_v41 }
 0x262   :  { %v2187_v43 = vpop.eup %1688  ;;  %1597 = vmatpush3.bf16.msra.mxu1 %v1594_v41  ;;  %v1211_v41 = vpop.permute.xlu0 %1210 }
 0x263   :  { %v1598_v45 = vpack.c.bf16 %v2185_v42, %v2187_v43 }
 0x265   :  { %v2191_v44 = vpop.eup %1690  ;;  %1599 = vmatprep.subr.bf16.mxu1 %v1598_v45 }
 0x266   :  { %v2193_v46 = vpop.eup %1692  ;;  %1601 = vmatpush3.bf16.msra.mxu1 %v1598_v45  ;;  %v1216_v45 = vpop.permute.xlu1 %1215 }
 0x267   :  { %v1602_v48 = vpack.c.bf16 %v2191_v44, %v2193_v46 }
 0x269   :  { %1603 = vmatprep.subr.bf16.mxu1 %v1602_v48 }
 0x26a   :  { %1605 = vmatpush3.bf16.msra.mxu1 %v1602_v48 }
 0x26d   :  { %1559 = vmatmul.mubr.msk.f32.vlgmr.msra.gmra.mrb[24].mxu1 %vm61_vm0, %v966_v49 }
 0x26e   :  { %1561 = vmatprep.mubr.msk.f32.mxu1 %vm61_vm0, %v967_v47 }
 0x271   :  { %1562 = vmatmul.mubr.msk.f32.gmra.mrb[26].mxu1 %vm61_vm0, %v968_v50 }
 0x272   :  { %1564 = vmatprep.mubr.msk.f32.mxu1 %vm61_vm0, %v969_v51 }
 0x275   :  { %1565 = vmatmul.mubr.msk.f32.gmra.mrb[28].mxu1 %vm61_vm0, %v970_v52 }
 0x276   :  { %1567 = vmatprep.mubr.msk.f32.mxu1 %vm61_vm0, %v971_v53 }
 0x279   :  { %1568 = vmatmul.mubr.msk.f32.gmra.mrb[30].mxu1 %vm61_vm0, %v972_v54 }
 0x340   :  { %v1560_v59 = vpop.f32.mrb[24].mxu1 }
 0x341   :  { %v1117_v60 = vadd.f32 %v1560_v59, %v989_v56  ;;  %v1111_v61 = vpop.f32.mrb[25].mxu1 }
 0x342   :  { %v1112_v62 = vadd.f32 %v1111_v61, %v984_v55 }
 0x343   :  { %v1151_v0 = vmul.f32 0.5, %v1117_v60 }
 0x344   :  { %v1150_v2 = vmul.f32 0.5, %v1112_v62  ;;  %v1563_v3 = vpop.f32.mrb[26].mxu1 }
 0x345   :  { %1694 = vtanh.f32 %v1151_v0  ;;  %v1127_v4 = vadd.f32 %v1563_v3, %v999_v58  ;;  %v1121_v5 = vpop.f32.mrb[27].mxu1  ;;  %v1221_v0 = vpop.permute.xlu0 %1220 }
 0x346   :  { %1696 = vtanh.f32 %v1150_v2  ;;  %v1122_v6 = vadd.f32 %v1121_v5, %v994_v57 }
 0x347   :  { %v1153_v7 = vmul.f32 0.5, %v1127_v4 }
 0x348   :  { %v1152_v8 = vmul.f32 0.5, %v1122_v6  ;;  %v1566_v9 = vpop.f32.mrb[28].mxu1 }
 0x349   :  { %1698 = vtanh.f32 %v1153_v7  ;;  %v1137_v10 = vadd.f32 %v1566_v9, %v1009_v1  ;;  %v1131_v11 = vpop.f32.mrb[29].mxu1  ;;  %v1226_v1 = vpop.permute.xlu1 %1225 }
 0x34a   :  { %1700 = vtanh.f32 %v1152_v8  ;;  %v1132_v14 = vadd.f32 %v1131_v11, %v1004_v63 }
 0x34b   :  { %v1155_v15 = vmul.f32 0.5, %v1137_v10 }
 0x34c   :  { %v1154_v16 = vmul.f32 0.5, %v1132_v14  ;;  %v1569_v17 = vpop.f32.mrb[30].mxu1  ;;  %v1231_v14 = vpop.permute.xlu0 %1230 }
 0x34d   :  { %1702 = vtanh.f32 %v1155_v15  ;;  %v1147_v18 = vadd.f32 %v1569_v17, %v1019_v13  ;;  %v1141_v19 = vpop.f32.mrb[31].mxu1  ;;  %v1236_v15 = vpop.permute.xlu1 %1235 }
 0x34e   :  { %1704 = vtanh.f32 %v1154_v16  ;;  %v1142_v20 = vadd.f32 %v1141_v19, %v1014_v12 }
 0x34f   :  { %v1695_v22 = vpop.eup %1694  ;;  %v1157_v24 = vmul.f32 0.5, %v1147_v18 }
 0x350   :  { %v1697_v25 = vpop.eup %1696  ;;  %v1167_v28 = vadd.f32 1.0, %v1695_v22  ;;  %v1156_v29 = vmul.f32 0.5, %v1142_v20 }
 0x351   :  { %v1166_v30 = vadd.f32 1.0, %v1697_v25  ;;  %1706 = vtanh.f32 %v1157_v24 }
 0x352   :  { %v1175_v31 = vmul.f32 0.5, %v1167_v28  ;;  %1708 = vtanh.f32 %v1156_v29 }
 0x353   :  { %v1699_v32 = vpop.eup %1698  ;;  %v1174_v33 = vmul.f32 0.5, %v1166_v30  ;;  %v1272_v30 = vpop.permute.xlu0 %1271 }
 0x354   :  { %v1701_v21 = vpop.eup %1700  ;;  %v1183_v34 = vmul.f32 %v2173_v36, %v1175_v31  ;;  %v1169_v35 = vadd.f32 1.0, %v1699_v32 }
 0x355   :  { %v1182_v37 = vmul.f32 %v2175_v23, %v1174_v33  ;;  %v1168_v38 = vadd.f32 1.0, %v1701_v21 }
 0x356   :  { %v1239_v48 = vmul.f32 %v1206_v27, %v1183_v34  ;;  %v1177_v49 = vmul.f32 0.5, %v1169_v35 }
 0x357   :  { %v1703_v47 = vpop.eup %1702  ;;  %v1238_v50 = vmul.f32 %v1201_v26, %v1182_v37  ;;  %v1176_v51 = vmul.f32 0.5, %v1168_v38 }
 0x358   :  { %v1705_v52 = vpop.eup %1704  ;;  %v1248_v53 = vsel %vm1246_vm2, %v1239_v48, 0.0  ;;  %v1185_v54 = vmul.f32 %v2179_v39, %v1177_v49  ;;  %v1171_v55 = vadd.f32 1.0, %v1703_v47 }
 0x359   :  { %v1247_v36 = vsel %vm1246_vm2, %v1238_v50, 0.0  ;;  %v1184_v56 = vmul.f32 %v2181_v40, %v1176_v51  ;;  %v1170_v57 = vadd.f32 1.0, %v1705_v52 }
 0x35a   :  { %v1249_v23 = vadd.f32 %v1248_v53, %v1247_v36  ;;  %v1179_v58 = vmul.f32 0.5, %v1171_v55  ;;  %v1241_v60 = vmul.f32 %v1216_v45, %v1185_v54 }
 0x35b   :  { %v1707_v59 = vpop.eup %1706  ;;  %v1240_v61 = vmul.f32 %v1211_v41, %v1184_v56  ;;  %v1178_v62 = vmul.f32 0.5, %v1170_v57 }
 0x35c   :  { %v1709_v63 = vpop.eup %1708  ;;  %v1187_v2 = vmul.f32 %v2185_v42, %v1179_v58  ;;  %v1173_v3 = vadd.f32 1.0, %v1707_v59  ;;  %v1252_v7 = vsel %vm1246_vm2, %v1241_v60, 0.0 }
 0x35d   :  { %v1250_v39 = vsel %vm1246_vm2, %v1240_v61, 0.0  ;;  %v1186_v4 = vmul.f32 %v2187_v43, %v1178_v62  ;;  %v1172_v5 = vadd.f32 1.0, %v1709_v63 }
 0x35e   :  { %v1251_v6 = vadd.f32 %v1250_v39, %v1249_v23  ;;  %v1181_v40 = vmul.f32 0.5, %v1173_v3  ;;  %v1243_v8 = vmul.f32 %v1226_v1, %v1187_v2 }
 0x35f   :  { %v1242_v9 = vmul.f32 %v1221_v0, %v1186_v4  ;;  %v1180_v10 = vmul.f32 0.5, %v1172_v5 }
 0x360   :  { %v1253_v11 = vadd.f32 %v1252_v7, %v1251_v6  ;;  %v1189_v12 = vmul.f32 %v2191_v44, %v1181_v40  ;;  %v1256_v43 = vsel %vm1246_vm2, %v1243_v8, 0.0 }
 0x361   :  { %v1254_v13 = vsel %vm1246_vm2, %v1242_v9, 0.0  ;;  %v1188_v42 = vmul.f32 %v2193_v46, %v1180_v10 }
 0x362   :  { %v1255_v16 = vadd.f32 %v1254_v13, %v1253_v11  ;;  %v1245_v17 = vmul.f32 %v1236_v15, %v1189_v12 }
 0x363   :  { %v1244_v18 = vmul.f32 %v1231_v14, %v1188_v42 }
 0x364   :  { %v1257_v19 = vadd.f32 %v1256_v43, %v1255_v16  ;;  %v1260_v24 = vsel %vm1246_vm2, %v1245_v17, 0.0 }
 0x365   :  { %v1258_v20 = vsel %vm1246_vm2, %v1244_v18, 0.0 }
 0x366   :  { %v1259_v22 = vadd.f32 %v1258_v20, %v1257_v19 }
 0x368   :  { %v1261_v25 = vadd.f32 %v1260_v24, %v1259_v22 }
 0x36a   :  { %v1262_v26 = vrot.slane %v1261_v25, 4 }
 0x36c   :  { %v1263_v44 = vadd.f32 %v1262_v26, %v1261_v25 }
 0x36e   :  { %v1264_v27 = vrot.slane %v1263_v44, 2 }
 0x370   :  { %v1265_v28 = vadd.f32 %v1264_v27, %v1263_v44 }
 0x372   :  { %v1266_v29 = vrot.slane %v1265_v28, 1 }
 0x374   :  { %v1267_v46 = vadd.f32 %v1266_v29, %v1265_v28 }
 0x376   :  { %v1274_v31 = vadd.f32 %v1272_v30, %v1267_v46 }
 0x378   :  { %1710 = vtanh.f32 %v1274_v31 }
 0x382   :  { %v1711_v32 = vpop.eup %1710 }
 0x383   :  { %1277 = vst.msk [vmem:[#allocation2] sm:$0x1] %vm1276_vm3, %v1711_v32 }
 0x384   :  { %1723 = shalt.err (!%p1720_p4)
}
 0x385   :  { %s1724_s11 = scalar_lea.hbm %s2258_s5, 16 }
 0x386   :  { %p1725_p5 = scmp.ne.s32.totalorder %s2258_s5, %s1724_s11  ;;  %p1728_p6 = scmp.lt.u32.totalorder %s1724_s11, %s2258_s5 }
 0x388   :  { %p1730_p7 = pnand %p1728_p6, %p1725_p5 }
 0x38a   :  { %1733 = shalt.err (!%p1730_p7)
}
 0x38b   :  { %1287 = dma.vmem_to_hbm [thread:$0]  %s1285_s7, 16, %s2258_s5, [#allocation3]  }
 0x38c   :  { %1734 = dma.done.wait [#allocation3], 16  }
 0x38d   :  { %1735 = vsyncadd [#allocation3], 4294967280 }
 0x38e   :  { %1291 = vsyncpa [#allocation3], 1 }

</bundles_post_ra>
